<compile_context>
chip_gen: v5e
topology: v5e:2x2
jax: 0.10.0
libtpu: 0.0.40
codegen_flags: <defaults>
</compile_context>

<pallas_src>
import jax
import jax.numpy as jnp
from jax import lax
from jax.experimental import pallas as pl
from jax.experimental.pallas import tpu as pltpu


def _conv3x3_im2col_kernel(xc_ref, w_ref, b_ref, o_ref):
    """One fused MXU matmul: (Cout, 27) @ (27, TILE_HW) + bias.

    xc_ref: (1, 27, T)    bf16 im2col tile (spatial HW on lanes -> lane-dense)
    w_ref : (Cout, 27)    bf16, constant index_map -> VMEM-resident
    b_ref : (Cout, 1)     f32
    o_ref : (1, Cout, T)  f32, lane-dense output (no masked partial stores)
    """
    acc = jnp.dot(w_ref[...], xc_ref[0], preferred_element_type=jnp.float32)
    o_ref[0] = (acc + b_ref[...]).astype(o_ref.dtype)


def conv3x3_same_pallas_flat(x_nchw, weight, bias, *, tile_hw=4096):
    """3x3 conv, stride 1, padding 1 (PyTorch Conv2d semantics).

    Input NCHW, output as (N, Cout, H*W) with H*W in the lane dimension.
    """
    n, cin, h, w = x_nchw.shape
    cout = weight.shape[0]
    hw = h * w
    k = 9 * cin

    # --- fused glue: im2col slab directly in the transposed (K, HW) layout,
    #     cast to bf16 first so the slab build itself moves half the bytes.
    xb = x_nchw.astype(jnp.bfloat16)
    xpad = jnp.pad(xb, ((0, 0), (0, 0), (1, 1), (1, 1)))
    taps = [xpad[:, :, ky:ky + h, kx:kx + w]
            for ky in range(3) for kx in range(3)]
    # [N, 9, Cin, H, W] -> [N, 9*Cin, H*W]; row index = (ky*3+kx)*Cin + ci
    xcol = jnp.stack(taps, axis=1).reshape(n, k, hw)

    # weights [Cout, Cin, 3, 3] -> [Cout, 9*Cin] with the same row ordering
    wmat = jnp.transpose(weight, (0, 2, 3, 1)).reshape(cout, k).astype(jnp.bfloat16)
    b2 = bias.reshape(cout, 1).astype(jnp.float32)

    # Lane-dim tile: multiple of 128, small enough to double-buffer comfortably
    # inside v7x's 64 MiB VMEM (in+out tiles here are < 2 MiB total).
    assert tile_hw % 128 == 0
    tile = hw if hw <= tile_hw else tile_hw
    grid = (n, pl.cdiv(hw, tile))

    y = pl.pallas_call(
        _conv3x3_im2col_kernel,
        out_shape=jax.ShapeDtypeStruct((n, cout, hw), jnp.float32),
        grid=grid,
        in_specs=[
            pl.BlockSpec((1, k, tile), lambda i, t: (i, 0, t)),
            pl.BlockSpec((cout, k), lambda i, t: (0, 0)),   # stays VMEM-resident
            pl.BlockSpec((cout, 1), lambda i, t: (0, 0)),   # stays VMEM-resident
        ],
        out_specs=pl.BlockSpec((1, cout, tile), lambda i, t: (i, 0, t)),
        compiler_params=pltpu.CompilerParams(
            dimension_semantics=("parallel", "parallel"),
            vmem_limit_bytes=32 * 1024 * 1024),
    )(xcol, wmat, b2)
    return y                                                  # (N, Cout, HW)


def pixel_shuffle_from_flat(y_flat, h, w, r):
    """nn.PixelShuffle(r) on a (N, C*r*r, H*W) conv output -> (N, C, H*r, W*r)."""
    n, c, hw = y_flat.shape
    co = c // (r * r)
    y = y_flat.reshape(n, co, r, r, h, w)
    y = jnp.transpose(y, (0, 1, 4, 2, 5, 3))
    return y.reshape(n, co, h * r, w * r)


class ESANPallas:
    """ESAN with default hyper-parameters (level=0)."""

    def __init__(self, key, in_nc=3, out_nc=3, nf=32, level=0, upscale=4):
        assert level == 0, "only the default level=0 forward path is implemented"
        self.upscale = upscale
        cout = out_nc * 4 * 4                                 # 48
        k_w, k_b = jax.random.split(key)
        # deterministic init (Conv2d-style uniform bound 1/sqrt(fan_in))
        fan_in = in_nc * 3 * 3
        bound = 1.0 / float(jnp.sqrt(fan_in))
        self.w0 = jax.random.uniform(k_w, (cout, in_nc, 3, 3), jnp.float32,
                                     -bound, bound)
        self.b0 = jax.random.uniform(k_b, (cout,), jnp.float32, -bound, bound)

    def __call__(self, x_nchw):
        n, c, h, w = x_nchw.shape
        y = conv3x3_same_pallas_flat(x_nchw, self.w0, self.b0)   # upconv0
        return pixel_shuffle_from_flat(y, h, w, 4)               # pixel_shuffle


def _reference_forward(x, wgt, b):
    n, c, h, w = x.shape
    y = lax.conv_general_dilated(
        x, wgt, window_strides=(1, 1), padding=((1, 1), (1, 1)),
        dimension_numbers=("NCHW", "OIHW", "NCHW"))
    y = y + b.reshape(1, -1, 1, 1)
    return pixel_shuffle_from_flat(y.reshape(n, wgt.shape[0], h * w), h, w, 4)


if __name__ == "__main__":
    key = jax.random.PRNGKey(0)
    k_x, k_p = jax.random.split(key)
    x = jax.random.normal(k_x, (2, 3, 16, 16), jnp.float32)       # NCHW input

    model = ESANPallas(k_p)
    out = jax.jit(model.__call__)(x)
    out = jax.block_until_ready(out)

    assert out.shape == (2, 3, 64, 64), out.shape

    ref = _reference_forward(x, model.w0, model.b0)
    max_err = float(jnp.max(jnp.abs(out - ref)))
    # bf16 MXU operands with f32 accumulation -> small, bounded error.
    assert jnp.allclose(out, ref, atol=3e-2, rtol=3e-2), max_err

    print("KERNEL_OK")
</pallas_src>

<mosaic_0001>
module attributes {stable_mosaic.version = 11 : i64} {
  func.func @_conv3x3_im2col_kernel(%arg0: i32, %arg1: i32, %arg2: memref<1x27x256xbf16, #tpu.memory_space<vmem>>, %arg3: memref<48x27xbf16, #tpu.memory_space<vmem>>, %arg4: memref<48x1xf32, #tpu.memory_space<vmem>>, %arg5: memref<1x48x256xf32, #tpu.memory_space<vmem>>) attributes {dimension_semantics = [#tpu.dimension_semantics<parallel>, #tpu.dimension_semantics<parallel>], iteration_bounds = array<i64: 2, 1>, scalar_prefetch = 0 : i64, scratch_operands = 0 : i64, tpu.core_type = #tpu.core_type<tc>, window_params = [{transform_indices = @transform_0, window_bounds = array<i64: 1, 27, 256>}, {pipeline_mode = #tpu.pipeline_mode<synchronous>, transform_indices = @transform_1, window_bounds = array<i64: 48, 27>}, {pipeline_mode = #tpu.pipeline_mode<synchronous>, transform_indices = @transform_2, window_bounds = array<i64: 48, 1>}, {transform_indices = @transform_3, window_bounds = array<i64: 1, 48, 256>}]} {
    %c0 = arith.constant 0 : index
    %c0_0 = arith.constant 0 : index
    %0 = vector.load %arg3[%c0, %c0_0] : memref<48x27xbf16, #tpu.memory_space<vmem>>, vector<48x27xbf16>
    %c0_1 = arith.constant 0 : index
    %c0_2 = arith.constant 0 : index
    %c0_3 = arith.constant 0 : index
    %1 = vector.load %arg2[%c0_1, %c0_2, %c0_3] : memref<1x27x256xbf16, #tpu.memory_space<vmem>>, vector<1x27x256xbf16>
    %2 = vector.shape_cast %1 : vector<1x27x256xbf16> to vector<27x256xbf16>
    %cst = arith.constant dense<0.000000e+00> : vector<48x256xf32>
    %3 = tpu.matmul %0, %2, %cst {dimension_numbers = #tpu.dot_dimension_numbers<[1], [0], [0], [1], [0, 0, 1, 1], [], []>} : vector<48x27xbf16>, vector<27x256xbf16>, vector<48x256xf32> -> vector<48x256xf32>
    %c0_4 = arith.constant 0 : index
    %c0_5 = arith.constant 0 : index
    %4 = vector.load %arg4[%c0_4, %c0_5] : memref<48x1xf32, #tpu.memory_space<vmem>>, vector<48x1xf32>
    %5 = vector.broadcast %4 : vector<48x1xf32> to vector<48x256xf32>
    %6 = arith.addf %3, %5 : vector<48x256xf32>
    %c0_6 = arith.constant 0 : index
    %c0_7 = arith.constant 0 : index
    %c0_8 = arith.constant 0 : index
    %7 = vector.load %arg5[%c0_6, %c0_7, %c0_8] : memref<1x48x256xf32, #tpu.memory_space<vmem>>, vector<1x48x256xf32>
    %8 = vector.shape_cast %7 : vector<1x48x256xf32> to vector<48x256xf32>
    %9 = vector.shape_cast %6 : vector<48x256xf32> to vector<1x48x256xf32>
    tpu.vector_store %arg5[%c0_6, %c0_7, %c0_8], %9 {strides = array<i32>} : memref<1x48x256xf32, #tpu.memory_space<vmem>>, vector<1x48x256xf32>,
    return
  }
  func.func @transform_0(%arg0: i32, %arg1: i32) -> (i32, i32, i32) {
    %c0_i32 = arith.constant 0 : i32
    %c0_i32_0 = arith.constant 0 : i32
    return %arg0, %c0_i32, %arg1 : i32, i32, i32
  }
  func.func @transform_1(%arg0: i32, %arg1: i32) -> (i32, i32) {
    %c0_i32 = arith.constant 0 : i32
    %c0_i32_0 = arith.constant 0 : i32
    %c0_i32_1 = arith.constant 0 : i32
    return %c0_i32, %c0_i32_0 : i32, i32
  }
  func.func @transform_2(%arg0: i32, %arg1: i32) -> (i32, i32) {
    %c0_i32 = arith.constant 0 : i32
    %c0_i32_0 = arith.constant 0 : i32
    %c0_i32_1 = arith.constant 0 : i32
    return %c0_i32, %c0_i32_0 : i32, i32
  }
  func.func @transform_3(%arg0: i32, %arg1: i32) -> (i32, i32, i32) {
    %c0_i32 = arith.constant 0 : i32
    %c0_i32_0 = arith.constant 0 : i32
    return %arg0, %c0_i32, %arg1 : i32, i32, i32
  }
}

</mosaic_0001>

<bundles_post_ra>
// kernel: a_call__.1
= control target key start
LH: loop header
LB: loop body
LE: loop exit
PB: predicated region body
PF: predicated region fallthrough
CT: control target
= control target key end

     0   :  { %8 = vsyncpa [#allocation3], 0  ;;  %s838_s0 = inlined_call_operand.vmem [shape: bf16[2,27,256], index: 0, kind: input, shape index: {}]   ;;  %s839_s1 = inlined_call_operand.hbm [shape: bf16[48,27], index: 1, kind: input, shape index: {}]   ;;  %s840_s2 = inlined_call_operand.hbm [shape: f32[48,1], index: 2, kind: input, shape index: {}]   ;;  %s841_s3 = inlined_call_operand.vmem [shape: f32[2,48,256], index: 3, kind: output, shape index: {}]  }
   0x1   :  { %9 = vsyncpa [#allocation5], 0  ;;  %s748_s12 = smov 0   ;;  %s750_s13 = smov 0  }
   0x2   :  { %s752_s14 = smov 0  }
   0x3 LB: > { %s513_s15 = sadd.s32 4294967295, %s718_s14   ;;  %s27_s16 = sadd.s32 1, %s714_s13  ;;  %s718_s14 = sphi %s752_s14, %s15_s14   ;;  %s714_s13 = sphi %s750_s13, %s845_s13   ;;  %s710_s12 = sphi %s748_s12, %s844_s12  }
   0x4   : > { %p29_p0 = scmp.ge.s32.totalorder %s27_s16, 2  ;;  %p515_p1 = scmp.ge.s32.totalorder %s718_s14, 1 }
   0x5   : > { %p130_p2 = scmp.lt.s32.totalorder %s718_s14, 3  ;;  %p773_p4 = scmp.eq.s32.totalorder %s513_s15, 0 }
   0x6   : > { %s847_s16 = smov (%p29_p0, %s27_s16), 0  ;;  %s141_s21 = sshll.u32 %s839_s1, 4  ;;  %s142_s21 = int_to_ptr.hbm [resolvable:$true] %s141_s21 }
   0x7   : > { %p769_p3 = pnand %p515_p1, %p130_p2  ;;  %s720_s22 = smov [#allocation2]  }
   0x8   : > { %s143_s23 = sshll.u32 %s720_s22, 4  ;;  %s155_s26 = sshll.u32 %s840_s2, 4  ;;  %s144_s23 = int_to_ptr.vmem [resolvable:$true] %s143_s23  ;;  %s156_s26 = int_to_ptr.hbm [resolvable:$true] %s155_s26 }
   0x9   : > { %p582_p5 = pneg %p769_p3  ;;  %s721_s27 = smov 64  }
   0xa   : > { %s722_s28 = smov 4   ;;  %s723_s29 = smov [#allocation4]  }
   0xb   : > { %p583_p6 = pnand %p773_p4, %p582_p5  ;;  %s157_s30 = sshll.u32 %s723_s29, 4  ;;  %s158_s30 = int_to_ptr.vmem [resolvable:$true] %s157_s30 }
   0xc   : > { %s724_s4 = smov 128   ;;  %s725_s5 = smov 8  }
   0xd   : > { %585 = dma.hbm_to_vmem [thread:$0]  (!%p583_p6), %s142_s21, 384, %s144_s23, [#allocation3], %s721_s27, %s721_s27, %s722_s28  }
   0xe   : > { %588 = dma.hbm_to_vmem [thread:$0]  (!%p583_p6), %s156_s26, 768, %s158_s30, [#allocation5], %s724_s4, %s724_s4, %s725_s5  }
   0xf   : > { %186 = sbr.rel (%p769_p3) target bundleno = 200 (0xc8), region = 32 }
  0x14   : > { %701 = dma.done.wait (%p773_p4), [#allocation3], 384  }
  0x15   : > { %703 = vsyncadd (%p773_p4), [#allocation3], 4294966912 }
  0x16   : > { %705 = dma.done.wait (%p773_p4), [#allocation5], 768  }
  0x17   : > { %707 = vsyncadd (%p773_p4), [#allocation5], 4294966528  ;;  %p225_p7 = scmp.lt.s32.totalorder %s710_s12, 1  ;;  %vm334_vm0 = vcmask 1044480   ;;  %v726_v0 = vmov 0   ;;  %vm335_vm1 = vcmask 1045504  }
  0x18   : > { %626 = vset.pattern.permute.xlu1 %v726_v0  ;;  %625 = vset.pattern.permute.xlu0 %v726_v0  ;;  %v727_v1 = vmov 65535   ;;  %v257_v15 = vld [vmem:[#allocation4 + $0x10] sm:$0xff]  ;;  %v255_v17 = vld [vmem:[#allocation4] sm:$0xff]  ;;  %v562_v22 = vld [vmem:[#allocation2] sm:$0xff]  ;;  %vm324_vm2 = vcmask 220160  }
  0x19   : > { %s849_s12 = smov (!%p225_p7, %s710_s12), 1  ;;  %v336_v2 = vsel %vm334_vm0, 4294967295, %v727_v1  ;;  %627 = vset.pattern.permute.xlu2 %v726_v0  ;;  %273 = vperm.xlu1 %626, %v257_v15   ;;  %v259_v19 = vld [vmem:[#allocation4 + $0x20] sm:$0xff]  ;;  %v563_v21 = vld [vmem:[#allocation2 + $0x8] sm:$0xff]  ;;  %v258_v23 = vld [vmem:[#allocation4 + $0x18] sm:$0xff] }
  0x1a   : > { %s561_s6 = sshll.u32 %s849_s12, 5  ;;  %v337_v3 = vsel %vm335_vm1, %v336_v2, 0  ;;  %263 = vperm.xlu0 %625, %v255_v17   ;;  %283 = vperm.xlu2 %627, %v259_v19   ;;  %v256_v24 = vld [vmem:[#allocation4 + $0x8] sm:$0xff]  ;;  %v564_v26 = vld [vmem:[#allocation2 + $0x10] sm:$0xff]  ;;  %s573_s10 = smul.u32 96, %s849_s12 }
  0x1b   : > { %s232_s9 = scalar_lea.vmem %s838_s0, %s561_s6  ;;  %v260_v25 = vld [vmem:[#allocation4 + $0x28] sm:$0xff] }
  0x1c   : > { %v547_v4 = vld [vmem:[%s232_s9 + $0x10] sm:$0xf]  ;;  %v568_v5 = vld [vmem:[%s232_s9 + $0x14] sm:$0x30]  ;;  %v567_v6 = vld [vmem:[%s232_s9 + $0x14] sm:$0xf]  ;;  %s815_s17 = scalar_lea.vmem %s841_s3, %s573_s10 }
  0x1d   : > { %v548_v7 = vor.u32 %v568_v5, %v547_v4  ;;  %v549_v8 = vld [vmem:[%s232_s9 + $0x18] sm:$0x30]  ;;  %v539_v10 = vld [vmem:[%s232_s9] sm:$0xf]  ;;  %v566_v11 = vld [vmem:[%s232_s9 + $0x4] sm:$0xf0] }
  0x1e   : > { %v552_v9 = vor.u32 %v567_v6, %v549_v8  ;;  %v565_v13 = vld [vmem:[%s232_s9 + $0x4] sm:$0xf]  ;;  %v541_v14 = vld [vmem:[%s232_s9 + $0x8] sm:$0xf0]  ;;  %v540_v18 = vor.u32 %v566_v11, %v539_v10 }
  0x1f   : > { %v339_v12 = vand.u32 %v548_v7, %v337_v3  ;;  %v544_v20 = vor.u32 %v565_v13, %v541_v14 }
  0x20   : > { %v342_v16 = vand.u32 %v552_v9, %v337_v3 }
  0x21   : > { %569 = vmatpush.bf16.msra.mxu2 %v339_v12  ;;  %350 = vmatpush.bf16.msra.mxu0 %v339_v12 }
  0x22   : > { %571 = vmatpush.bf16.msra.mxu3 %v342_v16  ;;  %374 = vmatpush.bf16.msra.mxu1 %v342_v16 }
  0x23   : > { %278 = vperm.xlu1 %626, %v258_v23   ;;  %268 = vperm.xlu0 %625, %v256_v24  }
  0x24   : > { %288 = vperm.xlu2 %627, %v260_v25  }
  0x25   : > { %570 = vmatpush.bf16.msra.mxu2 %v540_v18  ;;  %351 = vmatpush.bf16.msra.mxu0 %v540_v18 }
  0x26   : > { %572 = vmatpush.bf16.msra.mxu3 %v544_v20  ;;  %375 = vmatpush.bf16.msra.mxu1 %v544_v20 }
  0x28   : > { %554 = vmatmul.msk.bf16.vlgmr.msra.gmra.mxu2 %vm324_vm2, %v563_v21  ;;  %553 = vmatmul.msk.bf16.vlgmr.msra.gmra.mxu0 %vm324_vm2, %v562_v22 }
  0x29   : > { %557 = vmatmul.msk.bf16.vlgmr.msra.gmra.mxu3 %vm324_vm2, %v563_v21  ;;  %556 = vmatmul.msk.bf16.vlgmr.msra.gmra.mxu1 %vm324_vm2, %v562_v22 }
  0x38   : > { %555 = vmatmul.msk.bf16.gmra.mxu2 %vm324_vm2, %v564_v26 }
  0x39   : > { %558 = vmatmul.msk.bf16.gmra.mxu3 %vm324_vm2, %v564_v26 }
  0x74   : > { %v284_v47 = vpop.permute.xlu2 %283 }
  0x7e   : > { %v289_v52 = vpop.permute.xlu2 %288 }
  0x8b   : > { %v274_v31 = vpop.permute.xlu1 %273 }
  0x8c   : > { %v264_v27 = vpop.permute.xlu0 %263 }
  0x95   : > { %v269_v34 = vpop.permute.xlu0 %268  ;;  %v279_v42 = vpop.permute.xlu1 %278 }
  0xa5   : > { %v353_v28 = vpop.f32.mrf.mxu0 }
  0xa6   : > { %v354_v29 = vadd.f32 %v353_v28, %v264_v27  ;;  %v377_v30 = vpop.f32.mrf.mxu1 }
  0xa7   : > { %v378_v32 = vadd.f32 %v377_v30, %v264_v27 }
  0xa8   : > { %392 = vst [vmem:[%s815_s17] sm:$0xff] %v354_v29 }
  0xa9   : > { %393 = vst [vmem:[%s815_s17 + $0x8] sm:$0xff] %v378_v32 }
  0xab   : > { %v358_v33 = vpop.f32.mrf.mxu2 }
  0xac   : > { %v359_v35 = vadd.f32 %v358_v33, %v274_v31  ;;  %v382_v36 = vpop.f32.mrf.mxu3 }
  0xad   : > { %v383_v37 = vadd.f32 %v382_v36, %v274_v31  ;;  %v355_v38 = vpop.f32.mrf.mxu0 }
  0xae   : > { %396 = vst [vmem:[%s815_s17 + $0x20] sm:$0xff] %v359_v35  ;;  %v356_v39 = vadd.f32 %v355_v38, %v269_v34  ;;  %v379_v40 = vpop.f32.mrf.mxu1 }
  0xaf   : > { %397 = vst [vmem:[%s815_s17 + $0x28] sm:$0xff] %v383_v37  ;;  %v380_v41 = vadd.f32 %v379_v40, %v269_v34 }
  0xb0   : > { %394 = vst [vmem:[%s815_s17 + $0x10] sm:$0xff] %v356_v39 }
  0xb1   : > { %395 = vst [vmem:[%s815_s17 + $0x18] sm:$0xff] %v380_v41 }
  0xb3   : > { %v360_v43 = vpop.f32.mrf.mxu2 }
  0xb4   : > { %v361_v44 = vadd.f32 %v360_v43, %v279_v42  ;;  %v384_v45 = vpop.f32.mrf.mxu3 }
  0xb5   : > { %v385_v46 = vadd.f32 %v384_v45, %v279_v42 }
  0xb6   : > { %398 = vst [vmem:[%s815_s17 + $0x30] sm:$0xff] %v361_v44 }
  0xb7   : > { %399 = vst [vmem:[%s815_s17 + $0x38] sm:$0xff] %v385_v46 }
  0xbb   : > { %v363_v48 = vpop.f32.mrf.mxu2 }
  0xbc   : > { %v364_v49 = vadd.f32 %v363_v48, %v284_v47  ;;  %v387_v50 = vpop.f32.mrf.mxu3 }
  0xbd   : > { %v388_v51 = vadd.f32 %v387_v50, %v284_v47 }
  0xbe   : > { %400 = vst [vmem:[%s815_s17 + $0x40] sm:$0xff] %v364_v49 }
  0xbf   : > { %401 = vst [vmem:[%s815_s17 + $0x48] sm:$0xff] %v388_v51 }
  0xc3   : > { %v365_v53 = vpop.f32.mrf.mxu2 }
  0xc4   : > { %v366_v54 = vadd.f32 %v365_v53, %v289_v52  ;;  %v389_v55 = vpop.f32.mrf.mxu3 }
  0xc5   : > { %v390_v56 = vadd.f32 %v389_v55, %v289_v52 }
  0xc6   : > { %402 = vst [vmem:[%s815_s17 + $0x50] sm:$0xff] %v366_v54 }
  0xc7   : > { %403 = vst [vmem:[%s815_s17 + $0x58] sm:$0xff] %v390_v56 }
  0xc8 PF: > { %s15_s14 = sadd.s32 1, %s718_s14   ;;  %s844_s12 = smov %s714_s13 }
  0xc9   : > { %p12_p8 = scmp.ge.s32.totalorder %s15_s14, 4   ;;  %s845_s13 = smov %s847_s16 }
  0xcb   :  { %14 = sbr.rel (!%p12_p8) target bundleno = 3 (0x3), region = 71 }
  0xd0   :  { %434 = vsyncpa [#allocation3], 1 }
  0xd1   :  { %436 = vsyncpa [#allocation3 + $0x1], 1 }
  0xd2   :  { %437 = vsyncpa [#allocation5], 1 }

</bundles_post_ra>
